<compile_context>
chip_gen: v5e
topology: v5e:2x2
jax: 0.10.0
libtpu: 0.0.40
codegen_flags: <defaults>
</compile_context>

<pallas_src>
import jax
import jax.numpy as jnp
from jax.experimental import pallas as pl
from jax.experimental.pallas import tpu as pltpu

SCALED_SILU_FACTOR = 1.0 / 0.6  # gemnet/jmp ScaledSiLU


def _scaled_silu(x):
    # Reference-side ScaledSiLU: x * sigmoid(x) / 0.6.
    return x * (1.0 / (1.0 + jnp.exp(-x))) * SCALED_SILU_FACTOR


def _round_up(v, m):
    return ((v + m - 1) // m) * m


def _make_head_kernel(n_hidden, n_mol_pad, mm_dtype):
    """Hidden MLP layers (plain SiLU; 1/0.6 pre-folded into weights) + scatter-sum pooling."""

    def kernel(*refs):
        batch_ref, x_ref = refs[0], refs[1]
        wb = refs[2:2 + 2 * n_hidden]
        pooled_out = refs[2 + 2 * n_hidden]
        pooled_acc = refs[3 + 2 * n_hidden]

        i = pl.program_id(1)  # node-tile index within this core split ("arbitrary" axis)

        @pl.when(i == 0)
        def _init():
            pooled_acc[...] = jnp.zeros_like(pooled_acc)

        # Hidden Linear layers + SiLU.  Matmul operands in the weights' dtype (bf16 by
        # default) with f32 MXU accumulation; bias add / activation stay f32.
        h = x_ref[...]
        for l in range(n_hidden):
            w, b = wb[2 * l], wb[2 * l + 1]
            h = jnp.dot(h.astype(w.dtype), w[...],
                        preferred_element_type=jnp.float32) + b[...]
            h = h / (1.0 + jnp.exp(-h))          # SiLU (exp -> EUP); 1/0.6 folded downstream

        # scatter(..., reduce="sum") over this node tile as a one-hot MXU matmul with
        # bf16 operands (0/1 is exact in bf16) and f32 accumulation.  Padded nodes carry
        # batch id -1 and match no molecule row.
        tile_n = batch_ref.shape[1]
        mol_iota = jax.lax.broadcasted_iota(jnp.int32, (n_mol_pad, tile_n), 0)
        onehot = (mol_iota == batch_ref[...]).astype(mm_dtype)       # (n_mol_pad, tile_n)
        pooled_acc[...] += jnp.dot(onehot, h.astype(mm_dtype),
                                   preferred_element_type=jnp.float32)

        @pl.when(i == pl.num_programs(1) - 1)
        def _finalize():
            pooled_out[0] = pooled_acc[...]

    return kernel


def graph_multiclass_head(x, batch, params, n_molecules, *,
                          tile_n=2048, use_bf16=True, num_core_splits=1):
    """x: [N_nodes, E]; batch: [N_nodes] int32 molecule ids; params: [(W[in,out], b[out])]."""
    n_nodes, emb = x.shape
    hidden_params = params[:-1]
    w_last, b_last = params[-1]
    n_hidden = len(hidden_params)

    mm_dtype = jnp.bfloat16 if use_bf16 else jnp.float32
    itemsize = jnp.dtype(mm_dtype).itemsize

    # --- fold ScaledSiLU's 1/0.6 into the consumer of each activation -----------------
    # scaled_silu(h) @ W == silu(h) @ (SCALED_SILU_FACTOR * W)  (exact in real arithmetic).
    hidden_folded = [(w if l == 0 else w * SCALED_SILU_FACTOR, b)
                     for l, (w, b) in enumerate(hidden_params)]
    w_last_folded = w_last * SCALED_SILU_FACTOR

    # --- node-axis tiling --------------------------------------------------------------
    n_mol_pad = _round_up(max(int(n_molecules), 1), 8)
    # Cap tile_n so the (n_mol_pad, tile_n) one-hot slab stays within ~32 bf16 vregs.
    tile_cap = max(256, ((32 * 2048) // n_mol_pad) // 128 * 128)
    tile_n = min(int(tile_n), tile_cap)
    n_min = _round_up(n_nodes, 8)
    if n_min <= tile_n:
        tile_n = n_min                       # single tile == full (padded) array
    else:
        tile_n = _round_up(tile_n, 128)      # lane-legal (1, tile_n) batch blocks
    n_pad = _round_up(n_nodes, tile_n)
    n_tiles = n_pad // tile_n

    # Core split: keep 1 on single-TensorCore chips (v5e/v6e).  On v7x pass
    # num_core_splits=2 so the split axis is CORE_PARALLEL across the two TensorCores.
    num_splits = num_core_splits if (num_core_splits > 1
                                     and n_tiles % num_core_splits == 0) else 1
    tiles_per_split = n_tiles // num_splits

    # --- pad & prepare operands ----------------------------------------------------------
    pad = n_pad - n_nodes
    x_p = jnp.pad(x.astype(mm_dtype), ((0, pad), (0, 0)))            # cast before padding
    batch_p = jnp.pad(batch.astype(jnp.int32), (0, pad), constant_values=-1)
    batch_p = batch_p.reshape(1, n_pad)

    args = [batch_p, x_p]
    in_specs = [
        pl.BlockSpec((1, tile_n), lambda c, i: (0, c * tiles_per_split + i)),
        pl.BlockSpec((tile_n, emb), lambda c, i: (c * tiles_per_split + i, 0)),
    ]
    for w, b in hidden_folded:
        args.append(w.astype(mm_dtype))
        args.append(b.reshape(1, -1).astype(jnp.float32))
        in_specs.append(pl.BlockSpec(w.shape, lambda c, i: (0, 0)))
        in_specs.append(pl.BlockSpec((1, w.shape[1]), lambda c, i: (0, 0)))

    out_shape = jax.ShapeDtypeStruct((num_splits, n_mol_pad, emb), jnp.float32)
    out_specs = pl.BlockSpec((1, n_mol_pad, emb), lambda c, i: (c, 0, 0))
    scratch_shapes = [pltpu.VMEM((n_mol_pad, emb), jnp.float32)]     # pooled-sum accumulator

    # VMEM budget: double-buffered streaming blocks + resident weights + scratch/output.
    est = (
        2 * (tile_n * emb * itemsize + tile_n * 4)
        + sum(int(w.size) * itemsize + int(b.size) * 4 for w, b in hidden_folded)
        + 3 * n_mol_pad * emb * 4
    )
    vmem_limit = int(min(max(4 * est, 16 * 1024 * 1024), 48 * 1024 * 1024))

    split_sem = pltpu.CORE_PARALLEL if num_splits > 1 else "arbitrary"

    pooled_parts = pl.pallas_call(
        _make_head_kernel(n_hidden, n_mol_pad, mm_dtype),
        out_shape=out_shape,
        grid_spec=pltpu.PrefetchScalarGridSpec(
            num_scalar_prefetch=0,
            grid=(num_splits, tiles_per_split),
            in_specs=in_specs,
            out_specs=out_specs,
            scratch_shapes=scratch_shapes,
        ),
        compiler_params=pltpu.CompilerParams(
            dimension_semantics=(split_sem, "arbitrary"),
            vmem_limit_bytes=vmem_limit,
        ),
    )(*args)

    # Combine per-core partials + final affine layer commuted past the sum (exact:
    # sum_i (h_i @ W + b) = (sum_i h_i) @ W + count * b).  Counts depend only on
    # `batch`, so they are computed here rather than inside the kernel.
    pooled = pooled_parts.sum(axis=0)[:n_molecules]                  # [n_mol, E] f32
    counts = jnp.bincount(batch.astype(jnp.int32),
                          length=n_molecules).astype(jnp.float32)    # [n_mol]
    out = (jnp.dot(pooled, w_last_folded.astype(jnp.float32),
                   preferred_element_type=jnp.float32,
                   precision=jax.lax.Precision.HIGHEST)
           + counts[:, None] * b_last.reshape(1, -1).astype(jnp.float32))
    return out


def _init_linear(key, fan_in, fan_out):
    # Deterministic PyTorch-nn.Linear-style init: U(-1/sqrt(fan_in), 1/sqrt(fan_in)).
    kw, kb = jax.random.split(key)
    bound = 1.0 / (fan_in ** 0.5)
    w = jax.random.uniform(kw, (fan_in, fan_out), jnp.float32, -bound, bound)
    b = jax.random.uniform(kb, (fan_out,), jnp.float32, -bound, bound)
    return w, b


def _reference(x, batch, params, n_molecules, mm_dtype=jnp.float32):
    """Module-order reference: full MLP per node, then scatter-sum over molecules.

    mm_dtype lets us emulate the kernel's bf16 matmul operands (f32 accumulation)
    for a tighter structural comparison.
    """
    h = x
    for w, b in params[:-1]:
        h = jnp.dot(h.astype(mm_dtype), w.astype(mm_dtype),
                    preferred_element_type=jnp.float32) + b
        h = _scaled_silu(h)
    w_last, b_last = params[-1]
    y = jnp.dot(h, w_last, preferred_element_type=jnp.float32,
                precision=jax.lax.Precision.HIGHEST) + b_last        # [N, C]
    onehot = (batch[None, :] == jnp.arange(n_molecules)[:, None]).astype(jnp.float32)
    return jnp.dot(onehot, y, precision=jax.lax.Precision.HIGHEST)   # [n_mol, C]


if __name__ == "__main__":
    key = jax.random.PRNGKey(0)

    # Shapes consistent with the module: num_mlps=5, reduction="sum".
    emb_size_atom = 32          # config.backbone.emb_size_atom
    num_classes = 7             # classification_config.num_classes
    num_mlps = 5                # config.output.num_mlps -> 5 Linear layers
    dims = [emb_size_atom] * num_mlps + [num_classes]

    k_p, k_x1, k_x2, k_b2 = jax.random.split(key, 4)
    params = []
    for i, pkey in enumerate(jax.random.split(k_p, len(dims) - 1)):
        params.append(_init_linear(pkey, dims[i], dims[i + 1]))

    def check(x, batch, **kw):
        n_molecules = int(jnp.max(batch)) + 1          # as in the module forward
        out = jax.block_until_ready(
            graph_multiclass_head(x, batch, params, n_molecules, **kw))
        assert out.shape == (n_molecules, num_classes)
        # Structural check vs a reference using the same (bf16) matmul operand dtype.
        ref_q = _reference(x, batch, params, n_molecules, mm_dtype=jnp.bfloat16)
        assert jnp.allclose(out, ref_q, atol=1e-1, rtol=3e-2), (
            "mismatch vs dtype-matched reference: "
            f"{float(jnp.max(jnp.abs(out - ref_q)))}")
        # Semantic sanity check vs the pure-f32 module reference (covers bf16 cast error).
        ref_f = _reference(x, batch, params, n_molecules, mm_dtype=jnp.float32)
        tol = 0.1 * max(1.0, float(jnp.max(jnp.abs(ref_f))))
        assert float(jnp.max(jnp.abs(out - ref_f))) <= tol, \
            "bf16 kernel deviates too far from f32 reference"

    # Case 1: tiny graph batch (single node tile).
    n_nodes, n_mol = 32, 4
    x1 = jax.random.normal(k_x1, (n_nodes, emb_size_atom), jnp.float32)
    batch1 = jnp.repeat(jnp.arange(n_mol, dtype=jnp.int32), n_nodes // n_mol)
    check(x1, batch1)

    # Case 2: larger batch; default big-tile path (single 1024 tile).
    n_nodes, n_mol = 1024, 6
    x2 = jax.random.normal(k_x2, (n_nodes, emb_size_atom), jnp.float32)
    batch2 = jnp.sort(jax.random.randint(k_b2, (n_nodes,), 0, n_mol, dtype=jnp.int32))
    check(x2, batch2)

    # Case 3: same data with a smaller tile to exercise the node-tile grid + accumulator.
    check(x2, batch2, tile_n=256)

    print("KERNEL_OK")
</pallas_src>

<mosaic_0001>
module attributes {stable_mosaic.version = 11 : i64} {
  func.func @kernel(%arg0: i32, %arg1: i32, %arg2: memref<1x32xi32, #tpu.memory_space<vmem>>, %arg3: memref<32x32xbf16, #tpu.memory_space<vmem>>, %arg4: memref<32x32xbf16, #tpu.memory_space<vmem>>, %arg5: memref<1x32xf32, #tpu.memory_space<vmem>>, %arg6: memref<32x32xbf16, #tpu.memory_space<vmem>>, %arg7: memref<1x32xf32, #tpu.memory_space<vmem>>, %arg8: memref<32x32xbf16, #tpu.memory_space<vmem>>, %arg9: memref<1x32xf32, #tpu.memory_space<vmem>>, %arg10: memref<32x32xbf16, #tpu.memory_space<vmem>>, %arg11: memref<1x32xf32, #tpu.memory_space<vmem>>, %arg12: memref<1x8x32xf32, #tpu.memory_space<vmem>>, %arg13: memref<8x32xf32, #tpu.memory_space<vmem>>) attributes {dimension_semantics = [#tpu.dimension_semantics<arbitrary>, #tpu.dimension_semantics<arbitrary>], iteration_bounds = array<i64: 1, 1>, scalar_prefetch = 0 : i64, scratch_operands = 1 : i64, tpu.core_type = #tpu.core_type<tc>, window_params = [{transform_indices = @transform_0, window_bounds = array<i64: 1, 32>}, {transform_indices = @transform_1, window_bounds = array<i64: 32, 32>}, {pipeline_mode = #tpu.pipeline_mode<synchronous>, transform_indices = @transform_2, window_bounds = array<i64: 32, 32>}, {pipeline_mode = #tpu.pipeline_mode<synchronous>, transform_indices = @transform_3, window_bounds = array<i64: 1, 32>}, {pipeline_mode = #tpu.pipeline_mode<synchronous>, transform_indices = @transform_4, window_bounds = array<i64: 32, 32>}, {pipeline_mode = #tpu.pipeline_mode<synchronous>, transform_indices = @transform_5, window_bounds = array<i64: 1, 32>}, {pipeline_mode = #tpu.pipeline_mode<synchronous>, transform_indices = @transform_6, window_bounds = array<i64: 32, 32>}, {pipeline_mode = #tpu.pipeline_mode<synchronous>, transform_indices = @transform_7, window_bounds = array<i64: 1, 32>}, {pipeline_mode = #tpu.pipeline_mode<synchronous>, transform_indices = @transform_8, window_bounds = array<i64: 32, 32>}, {pipeline_mode = #tpu.pipeline_mode<synchronous>, transform_indices = @transform_9, window_bounds = array<i64: 1, 32>}, {transform_indices = @transform_10, window_bounds = array<i64: 1, 8, 32>}]} {
    %c0_i32 = arith.constant 0 : i32
    %0 = arith.cmpi eq, %arg1, %c0_i32 : i32
    %1 = arith.extui %0 : i1 to i32
    %c0_i32_0 = arith.constant 0 : i32
    %2 = arith.cmpi ne, %1, %c0_i32_0 : i32
    scf.if %2 {
      %cst_38 = arith.constant 0.000000e+00 : f32
      %66 = vector.broadcast %cst_38 : f32 to vector<8x32xf32>
      %c0_39 = arith.constant 0 : index
      %c0_40 = arith.constant 0 : index
      %67 = vector.load %arg13[%c0_39, %c0_40] : memref<8x32xf32, #tpu.memory_space<vmem>>, vector<8x32xf32>
      tpu.vector_store %arg13[%c0_39, %c0_40], %66 {strides = array<i32>} : memref<8x32xf32, #tpu.memory_space<vmem>>, vector<8x32xf32>,
    } else {
    }
    %c0 = arith.constant 0 : index
    %c0_1 = arith.constant 0 : index
    %3 = vector.load %arg3[%c0, %c0_1] : memref<32x32xbf16, #tpu.memory_space<vmem>>, vector<32x32xbf16>
    %c0_2 = arith.constant 0 : index
    %c0_3 = arith.constant 0 : index
    %4 = vector.load %arg4[%c0_2, %c0_3] : memref<32x32xbf16, #tpu.memory_space<vmem>>, vector<32x32xbf16>
    %cst = arith.constant dense<0.000000e+00> : vector<32x32xf32>
    %5 = tpu.matmul %3, %4, %cst {dimension_numbers = #tpu.dot_dimension_numbers<[1], [0], [0], [1], [0, 0, 1, 1], [], []>} : vector<32x32xbf16>, vector<32x32xbf16>, vector<32x32xf32> -> vector<32x32xf32>
    %c0_4 = arith.constant 0 : index
    %c0_5 = arith.constant 0 : index
    %6 = vector.load %arg5[%c0_4, %c0_5] : memref<1x32xf32, #tpu.memory_space<vmem>>, vector<1x32xf32>
    %7 = vector.broadcast %6 : vector<1x32xf32> to vector<32x32xf32>
    %8 = arith.addf %5, %7 : vector<32x32xf32>
    %cst_6 = arith.constant 0.000000e+00 : f32
    %9 = vector.broadcast %cst_6 : f32 to vector<32x32xf32>
    %10 = arith.subf %9, %8 : vector<32x32xf32>
    %11 = math.exp %10 : vector<32x32xf32>
    %cst_7 = arith.constant 1.000000e+00 : f32
    %12 = vector.broadcast %cst_7 : f32 to vector<32x32xf32>
    %13 = arith.addf %12, %11 : vector<32x32xf32>
    %14 = arith.divf %8, %13 : vector<32x32xf32>
    %15 = arith.truncf %14 : vector<32x32xf32> to vector<32x32xbf16>
    %c0_8 = arith.constant 0 : index
    %c0_9 = arith.constant 0 : index
    %16 = vector.load %arg6[%c0_8, %c0_9] : memref<32x32xbf16, #tpu.memory_space<vmem>>, vector<32x32xbf16>
    %cst_10 = arith.constant dense<0.000000e+00> : vector<32x32xf32>
    %17 = tpu.matmul %15, %16, %cst_10 {dimension_numbers = #tpu.dot_dimension_numbers<[1], [0], [0], [1], [0, 0, 1, 1], [], []>} : vector<32x32xbf16>, vector<32x32xbf16>, vector<32x32xf32> -> vector<32x32xf32>
    %c0_11 = arith.constant 0 : index
    %c0_12 = arith.constant 0 : index
    %18 = vector.load %arg7[%c0_11, %c0_12] : memref<1x32xf32, #tpu.memory_space<vmem>>, vector<1x32xf32>
    %19 = vector.broadcast %18 : vector<1x32xf32> to vector<32x32xf32>
    %20 = arith.addf %17, %19 : vector<32x32xf32>
    %cst_13 = arith.constant 0.000000e+00 : f32
    %21 = vector.broadcast %cst_13 : f32 to vector<32x32xf32>
    %22 = arith.subf %21, %20 : vector<32x32xf32>
    %23 = math.exp %22 : vector<32x32xf32>
    %cst_14 = arith.constant 1.000000e+00 : f32
    %24 = vector.broadcast %cst_14 : f32 to vector<32x32xf32>
    %25 = arith.addf %24, %23 : vector<32x32xf32>
    %26 = arith.divf %20, %25 : vector<32x32xf32>
    %27 = arith.truncf %26 : vector<32x32xf32> to vector<32x32xbf16>
    %c0_15 = arith.constant 0 : index
    %c0_16 = arith.constant 0 : index
    %28 = vector.load %arg8[%c0_15, %c0_16] : memref<32x32xbf16, #tpu.memory_space<vmem>>, vector<32x32xbf16>
    %cst_17 = arith.constant dense<0.000000e+00> : vector<32x32xf32>
    %29 = tpu.matmul %27, %28, %cst_17 {dimension_numbers = #tpu.dot_dimension_numbers<[1], [0], [0], [1], [0, 0, 1, 1], [], []>} : vector<32x32xbf16>, vector<32x32xbf16>, vector<32x32xf32> -> vector<32x32xf32>
    %c0_18 = arith.constant 0 : index
    %c0_19 = arith.constant 0 : index
    %30 = vector.load %arg9[%c0_18, %c0_19] : memref<1x32xf32, #tpu.memory_space<vmem>>, vector<1x32xf32>
    %31 = vector.broadcast %30 : vector<1x32xf32> to vector<32x32xf32>
    %32 = arith.addf %29, %31 : vector<32x32xf32>
    %cst_20 = arith.constant 0.000000e+00 : f32
    %33 = vector.broadcast %cst_20 : f32 to vector<32x32xf32>
    %34 = arith.subf %33, %32 : vector<32x32xf32>
    %35 = math.exp %34 : vector<32x32xf32>
    %cst_21 = arith.constant 1.000000e+00 : f32
    %36 = vector.broadcast %cst_21 : f32 to vector<32x32xf32>
    %37 = arith.addf %36, %35 : vector<32x32xf32>
    %38 = arith.divf %32, %37 : vector<32x32xf32>
    %39 = arith.truncf %38 : vector<32x32xf32> to vector<32x32xbf16>
    %c0_22 = arith.constant 0 : index
    %c0_23 = arith.constant 0 : index
    %40 = vector.load %arg10[%c0_22, %c0_23] : memref<32x32xbf16, #tpu.memory_space<vmem>>, vector<32x32xbf16>
    %cst_24 = arith.constant dense<0.000000e+00> : vector<32x32xf32>
    %41 = tpu.matmul %39, %40, %cst_24 {dimension_numbers = #tpu.dot_dimension_numbers<[1], [0], [0], [1], [0, 0, 1, 1], [], []>} : vector<32x32xbf16>, vector<32x32xbf16>, vector<32x32xf32> -> vector<32x32xf32>
    %c0_25 = arith.constant 0 : index
    %c0_26 = arith.constant 0 : index
    %42 = vector.load %arg11[%c0_25, %c0_26] : memref<1x32xf32, #tpu.memory_space<vmem>>, vector<1x32xf32>
    %43 = vector.broadcast %42 : vector<1x32xf32> to vector<32x32xf32>
    %44 = arith.addf %41, %43 : vector<32x32xf32>
    %cst_27 = arith.constant 0.000000e+00 : f32
    %45 = vector.broadcast %cst_27 : f32 to vector<32x32xf32>
    %46 = arith.subf %45, %44 : vector<32x32xf32>
    %47 = math.exp %46 : vector<32x32xf32>
    %cst_28 = arith.constant 1.000000e+00 : f32
    %48 = vector.broadcast %cst_28 : f32 to vector<32x32xf32>
    %49 = arith.addf %48, %47 : vector<32x32xf32>
    %50 = arith.divf %44, %49 : vector<32x32xf32>
    %51 = tpu.iota {dimensions = array<i32: 0>} : vector<8x32xi32>
    %c0_29 = arith.constant 0 : index
    %c0_30 = arith.constant 0 : index
    %52 = vector.load %arg2[%c0_29, %c0_30] : memref<1x32xi32, #tpu.memory_space<vmem>>, vector<1x32xi32>
    %53 = vector.broadcast %52 : vector<1x32xi32> to vector<8x32xi32>
    %54 = arith.cmpi eq, %51, %53 : vector<8x32xi32>
    %55 = arith.extui %54 : vector<8x32xi1> to vector<8x32xi32>
    %56 = arith.sitofp %55 : vector<8x32xi32> to vector<8x32xf32>
    %57 = arith.truncf %56 : vector<8x32xf32> to vector<8x32xbf16>
    %c0_31 = arith.constant 0 : index
    %c0_32 = arith.constant 0 : index
    %58 = vector.load %arg13[%c0_31, %c0_32] : memref<8x32xf32, #tpu.memory_space<vmem>>, vector<8x32xf32>
    %59 = arith.truncf %50 : vector<32x32xf32> to vector<32x32xbf16>
    %cst_33 = arith.constant dense<0.000000e+00> : vector<8x32xf32>
    %60 = tpu.matmul %57, %59, %cst_33 {dimension_numbers = #tpu.dot_dimension_numbers<[1], [0], [0], [1], [0, 0, 1, 1], [], []>} : vector<8x32xbf16>, vector<32x32xbf16>, vector<8x32xf32> -> vector<8x32xf32>
    %61 = arith.addf %58, %60 : vector<8x32xf32>
    %c0_34 = arith.constant 0 : index
    %c0_35 = arith.constant 0 : index
    %62 = vector.load %arg13[%c0_34, %c0_35] : memref<8x32xf32, #tpu.memory_space<vmem>>, vector<8x32xf32>
    tpu.vector_store %arg13[%c0_34, %c0_35], %61 {strides = array<i32>} : memref<8x32xf32, #tpu.memory_space<vmem>>, vector<8x32xf32>,
    %c0_i32_36 = arith.constant 0 : i32
    %63 = arith.cmpi eq, %arg1, %c0_i32_36 : i32
    %64 = arith.extui %63 : i1 to i32
    %c0_i32_37 = arith.constant 0 : i32
    %65 = arith.cmpi ne, %64, %c0_i32_37 : i32
    scf.if %65 {
      %c0_38 = arith.constant 0 : index
      %c0_39 = arith.constant 0 : index
      %66 = vector.load %arg13[%c0_38, %c0_39] : memref<8x32xf32, #tpu.memory_space<vmem>>, vector<8x32xf32>
      %c0_40 = arith.constant 0 : index
      %c0_41 = arith.constant 0 : index
      %c0_42 = arith.constant 0 : index
      %67 = vector.load %arg12[%c0_40, %c0_41, %c0_42] : memref<1x8x32xf32, #tpu.memory_space<vmem>>, vector<1x8x32xf32>
      %68 = vector.shape_cast %67 : vector<1x8x32xf32> to vector<8x32xf32>
      %69 = vector.shape_cast %66 : vector<8x32xf32> to vector<1x8x32xf32>
      tpu.vector_store %arg12[%c0_40, %c0_41, %c0_42], %69 {strides = array<i32>} : memref<1x8x32xf32, #tpu.memory_space<vmem>>, vector<1x8x32xf32>,
    } else {
    }
    return
  }
  func.func @transform_0(%arg0: i32, %arg1: i32) -> (i32, i32) {
    %c1_i32 = arith.constant 1 : i32
    %0 = arith.muli %arg0, %c1_i32 : i32
    %1 = arith.addi %0, %arg1 : i32
    %c0_i32 = arith.constant 0 : i32
    %c0_i32_0 = arith.constant 0 : i32
    return %c0_i32, %1 : i32, i32
  }
  func.func @transform_1(%arg0: i32, %arg1: i32) -> (i32, i32) {
    %c1_i32 = arith.constant 1 : i32
    %0 = arith.muli %arg0, %c1_i32 : i32
    %1 = arith.addi %0, %arg1 : i32
    %c0_i32 = arith.constant 0 : i32
    %c0_i32_0 = arith.constant 0 : i32
    return %1, %c0_i32 : i32, i32
  }
  func.func @transform_2(%arg0: i32, %arg1: i32) -> (i32, i32) {
    %c0_i32 = arith.constant 0 : i32
    %c0_i32_0 = arith.constant 0 : i32
    %c0_i32_1 = arith.constant 0 : i32
    return %c0_i32, %c0_i32_0 : i32, i32
  }
  func.func @transform_3(%arg0: i32, %arg1: i32) -> (i32, i32) {
    %c0_i32 = arith.constant 0 : i32
    %c0_i32_0 = arith.constant 0 : i32
    %c0_i32_1 = arith.constant 0 : i32
    return %c0_i32, %c0_i32_0 : i32, i32
  }
  func.func @transform_4(%arg0: i32, %arg1: i32) -> (i32, i32) {
    %c0_i32 = arith.constant 0 : i32
    %c0_i32_0 = arith.constant 0 : i32
    %c0_i32_1 = arith.constant 0 : i32
    return %c0_i32, %c0_i32_0 : i32, i32
  }
  func.func @transform_5(%arg0: i32, %arg1: i32) -> (i32, i32) {
    %c0_i32 = arith.constant 0 : i32
    %c0_i32_0 = arith.constant 0 : i32
    %c0_i32_1 = arith.constant 0 : i32
    return %c0_i32, %c0_i32_0 : i32, i32
  }
  func.func @transform_6(%arg0: i32, %arg1: i32) -> (i32, i32) {
    %c0_i32 = arith.constant 0 : i32
    %c0_i32_0 = arith.constant 0 : i32
    %c0_i32_1 = arith.constant 0 : i32
    return %c0_i32, %c0_i32_0 : i32, i32
  }
  func.func @transform_7(%arg0: i32, %arg1: i32) -> (i32, i32) {
    %c0_i32 = arith.constant 0 : i32
    %c0_i32_0 = arith.constant 0 : i32
    %c0_i32_1 = arith.constant 0 : i32
    return %c0_i32, %c0_i32_0 : i32, i32
  }
  func.func @transform_8(%arg0: i32, %arg1: i32) -> (i32, i32) {
    %c0_i32 = arith.constant 0 : i32
    %c0_i32_0 = arith.constant 0 : i32
    %c0_i32_1 = arith.constant 0 : i32
    return %c0_i32, %c0_i32_0 : i32, i32
  }
  func.func @transform_9(%arg0: i32, %arg1: i32) -> (i32, i32) {
    %c0_i32 = arith.constant 0 : i32
    %c0_i32_0 = arith.constant 0 : i32
    %c0_i32_1 = arith.constant 0 : i32
    return %c0_i32, %c0_i32_0 : i32, i32
  }
  func.func @transform_10(%arg0: i32, %arg1: i32) -> (i32, i32, i32) {
    %c0_i32 = arith.constant 0 : i32
    %c0_i32_0 = arith.constant 0 : i32
    %c0_i32_1 = arith.constant 0 : i32
    return %arg0, %c0_i32, %c0_i32_0 : i32, i32, i32
  }
}

</mosaic_0001>

<bundles_post_ra>
// kernel: tpu_custom_call.1
= control target key start
LH: loop header
LB: loop body
LE: loop exit
PB: predicated region body
PF: predicated region fallthrough
CT: control target
= control target key end

     0   :  { %15 = vsyncpa [#allocation4], 0  ;;  %s1243_s0 = inlined_call_operand.hbm [shape: s32[1,32], index: 0, kind: input, shape index: {}]   ;;  %s1244_s1 = inlined_call_operand.hbm [shape: bf16[32,32], index: 1, kind: input, shape index: {}]   ;;  %s1245_s2 = inlined_call_operand.hbm [shape: bf16[32,32], index: 2, kind: input, shape index: {}]   ;;  %s1246_s3 = inlined_call_operand.vmem [shape: f32[1,32], index: 3, kind: input, shape index: {}]   ;;  %s1247_s4 = inlined_call_operand.hbm [shape: bf16[32,32], index: 4, kind: input, shape index: {}]   ;;  %s1248_s5 = inlined_call_operand.vmem [shape: f32[1,32], index: 5, kind: input, shape index: {}]   ;;  %s1249_s6 = inlined_call_operand.hbm [shape: bf16[32,32], index: 6, kind: input, shape index: {}]   ;;  %s1250_s7 = inlined_call_operand.vmem [shape: f32[1,32], index: 7, kind: input, shape index: {}]   ;;  %s1251_s8 = inlined_call_operand.hbm [shape: bf16[32,32], index: 8, kind: input, shape index: {}]   ;;  %s1252_s9 = inlined_call_operand.vmem [shape: f32[1,32], index: 9, kind: input, shape index: {}]   ;;  %s1253_s10 = inlined_call_operand.hbm [shape: f32[1,8,32], index: 10, kind: output, shape index: {}]  }
   0x1   :  { %16 = vsyncpa [#allocation7], 0 }
   0x2   :  { %17 = vsyncpa [#allocation10], 0 }
   0x3   :  { %18 = vsyncpa [#allocation13], 0  ;;  %s41_s15 = sshll.u32 %s1244_s1, 4  ;;  %s42_s15 = int_to_ptr.hbm [resolvable:$true] %s41_s15 }
   0x4   :  { %19 = vsyncpa [#allocation5], 0  ;;  %s1020_s16 = smov [#allocation6]   ;;  %s69_s20 = sshll.u32 %s1247_s4, 4  ;;  %s70_s20 = int_to_ptr.hbm [resolvable:$true] %s69_s20 }
   0x5   :  { %s43_s17 = sshll.u32 %s1020_s16, 4  ;;  %s1021_s21 = smov 64   ;;  %s44_s17 = int_to_ptr.vmem [resolvable:$true] %s43_s17 }
   0x6   :  { %s1022_s22 = smov 4   ;;  %s1023_s23 = smov [#allocation9]  }
   0x7   :  { %49 = dma.hbm_to_vmem [thread:$0]  %s42_s15, 256, %s44_s17, [#allocation7], %s1021_s21, %s1021_s21, %s1022_s22  }
   0x8   :  { %s71_s24 = sshll.u32 %s1023_s23, 4  ;;  %s27_s26 = sshll.u32 %s1243_s0, 4  ;;  %s72_s24 = int_to_ptr.vmem [resolvable:$true] %s71_s24  ;;  %s28_s26 = int_to_ptr.hbm [resolvable:$true] %s27_s26 }
   0x9   :  { %77 = dma.hbm_to_vmem [thread:$0]  %s70_s20, 256, %s72_s24, [#allocation10], %s1021_s21, %s1021_s21, %s1022_s22  }
   0xa   :  { %s54_s28 = sshll.u32 %s1245_s2, 4  ;;  %s1024_s29 = smov [#allocation3]   ;;  %s55_s28 = int_to_ptr.hbm [resolvable:$true] %s54_s28 }
   0xb   :  { %s29_s30 = sshll.u32 %s1024_s29, 4  ;;  %s1025_s11 = smov [#allocation8]   ;;  %s30_s30 = int_to_ptr.vmem [resolvable:$true] %s29_s30 }
   0xc   :  { %32 = dma.hbm_to_vmem [thread:$0]  %s28_s26, 16, %s30_s30, [#allocation4]  }
   0xd   :  { %s56_s12 = sshll.u32 %s1025_s11, 4  ;;  %s84_s0 = sshll.u32 %s1249_s6, 4  ;;  %s57_s12 = int_to_ptr.vmem [resolvable:$true] %s56_s12  ;;  %s85_s0 = int_to_ptr.hbm [resolvable:$true] %s84_s0 }
   0xe   :  { %62 = dma.hbm_to_vmem [thread:$0]  %s55_s28, 256, %s57_s12, [#allocation7], %s1021_s21, %s1021_s21, %s1022_s22  }
   0xf   :  { %s99_s2 = sshll.u32 %s1251_s8, 4  ;;  %s1026_s17 = smov [#allocation11]   ;;  %s100_s2 = int_to_ptr.hbm [resolvable:$true] %s99_s2 }
  0x10   :  { %s86_s18 = sshll.u32 %s1026_s17, 4  ;;  %s1027_s19 = smov [#allocation12]   ;;  %s87_s18 = int_to_ptr.vmem [resolvable:$true] %s86_s18 }
  0x11   :  { %92 = dma.hbm_to_vmem [thread:$0]  %s85_s0, 256, %s87_s18, [#allocation10], %s1021_s21, %s1021_s21, %s1022_s22  }
  0x12   :  { %s101_s6 = sshll.u32 %s1027_s19, 4  ;;  %s102_s6 = int_to_ptr.vmem [resolvable:$true] %s101_s6 }
  0x13   :  { %107 = dma.hbm_to_vmem [thread:$0]  %s100_s2, 256, %s102_s6, [#allocation13], %s1021_s21, %s1021_s21, %s1022_s22  }
  0x14   :  { %1010 = dma.done.wait [#allocation4], 16  }
  0x15   :  { %1011 = vsyncadd [#allocation4], 4294967280 }
  0x16   :  { %1012 = dma.done.wait [#allocation7], 512  }
  0x17   :  { %1013 = vsyncadd [#allocation7], 4294966784 }
  0x18   :  { %1014 = dma.done.wait [#allocation10], 512  }
  0x19   :  { %1015 = vsyncadd [#allocation10], 4294966784 }
  0x1a   :  { %1016 = dma.done.wait [#allocation13], 256  }
  0x1b   :  { %1017 = vsyncadd [#allocation13], 4294967040  ;;  %v756_v0 = vld [vmem:[#allocation8 + $0x8] sm:$0xff]  ;;  %v755_v1 = vld [vmem:[#allocation8] sm:$0xff]  ;;  %vm142_vm0 = vcmask 261120   ;;  %s690_s26 = sshll.u32 %s1253_s10, 4  ;;  %s691_s26 = int_to_ptr.hbm [resolvable:$true] %s690_s26 }
  0x1c   :  { %191 = vmatpush.bf16.msra.mxu0 %v756_v0  ;;  %v753_v2 = vld [vmem:[#allocation6] sm:$0xff]  ;;  %v754_v3 = vld [vmem:[#allocation6 + $0x8] sm:$0xff]  ;;  %v773_v4 = vld [vmem:[%s1246_s3] ss:$0 sm:$0xff] }
  0x1d   :  { %v758_v9 = vld [vmem:[#allocation9 + $0x8] sm:$0xff]  ;;  %v757_v12 = vld [vmem:[#allocation9] sm:$0xff] }
  0x1e   :  { %314 = vmatpush.bf16.msra.mxu1 %v758_v9 }
  0x20   :  { %192 = vmatpush.bf16.msra.mxu0 %v755_v1 }
  0x22   :  { %315 = vmatpush.bf16.msra.mxu1 %v757_v12 }
  0x23   :  { %719 = vmatmul.msk.bf16.vlgmr.msra.gmra.mxu0 %vm142_vm0, %v753_v2 }
  0x33   :  { %720 = vmatmul.msk.bf16.gmra.mxu0 %vm142_vm0, %v754_v3 }
  0xa0   :  { %v194_v5 = vpop.f32.mrf.mxu0 }
  0xa1   :  { %v1123_v6 = vadd.f32 %v773_v4, %v194_v5 }
  0xa3   :  { %v204_v7 = vsub.f32 0.0, %v1123_v6 }
  0xa5   :  { %v208_v8 = vmul.f32 1.442695, %v204_v7 }
  0xa7   :  { %778 = vpow2.f32 %v208_v8 }
  0xa8   :  { %v196_v10 = vpop.f32.mrf.mxu0 }
  0xa9   :  { %v197_v11 = vadd.f32 %v773_v4, %v196_v10 }
  0xab   :  { %v205_v13 = vsub.f32 0.0, %v197_v11 }
  0xad   :  { %v779_v14 = vpop.eup %778  ;;  %v210_v15 = vmul.f32 1.442695, %v205_v13  ;;  %v774_v13 = vld [vmem:[%s1248_s5] ss:$0 sm:$0xff] }
  0xae   :  { %v216_v16 = vadd.f32 1.0, %v779_v14 }
  0xaf   :  { %780 = vpow2.f32 %v210_v15 }
  0xb0   :  { %782 = vrcp.f32 %v216_v16  ;;  %v199_v17 = vpop.f32.mrf.mxu0  ;;  %v231_v36 = vand.u32 2147483648, %v216_v16  ;;  %vm225_vm2 = vweird.f32 %v216_v16  ;;  %v229_v37 = vand.u32 2147483647, %v216_v16 }
  0xb1   :  { %v1126_v18 = vadd.f32 %v773_v4, %v199_v17 }
  0xb2   :  { %v232_v43 = vor.u32 1.1754944e-38, %v231_v36  ;;  %vm230_vm5 = vcmp.eq.f32.partialorder %v229_v37, 8.507059e+37 }
  0xb3   :  { %v206_v19 = vsub.f32 0.0, %v1126_v18 }
  0xb5   :  { %v781_v20 = vpop.eup %780  ;;  %v212_v21 = vmul.f32 1.442695, %v206_v19  ;;  %v760_v19 = vld [vmem:[#allocation11 + $0x8] sm:$0xff] }
  0xb6   :  { %v783_v22 = vpop.eup %782  ;;  %v217_v23 = vadd.f32 1.0, %v781_v20  ;;  %437 = vmatpush.bf16.msra.mxu2 %v760_v19 }
  0xb7   :  { %v221_v24 = vmul.f32 %v783_v22, %v216_v16  ;;  %784 = vpow2.f32 %v212_v21  ;;  %vm226_vm1 = vweird.f32 %v783_v22  ;;  %v759_v21 = vld [vmem:[#allocation11] sm:$0xff] }
  0xb8   :  { %786 = vrcp.f32 %v217_v23  ;;  %v201_v25 = vpop.f32.mrf.mxu0  ;;  %vm227_vm3 = vmor %vm225_vm2, %vm226_vm1  ;;  %v246_v39 = vand.u32 2147483648, %v217_v23  ;;  %v244_v42 = vand.u32 2147483647, %v217_v23  ;;  %vm240_vm6 = vweird.f32 %v217_v23 }
  0xb9   :  { %v222_v26 = vsub.f32 1.0, %v221_v24  ;;  %v1129_v27 = vadd.f32 %v773_v4, %v201_v25 }
  0xba   :  { %v247_v48 = vor.u32 1.1754944e-38, %v246_v39  ;;  %vm245_vm8 = vcmp.eq.f32.partialorder %v244_v42, 8.507059e+37  ;;  %438 = vmatpush.bf16.msra.mxu2 %v759_v21 }
  0xbb   :  { %v223_v28 = vmul.f32 %v783_v22, %v222_v26  ;;  %v207_v29 = vsub.f32 0.0, %v1129_v27 }
  0xbd   :  { %v785_v30 = vpop.eup %784  ;;  %v214_v31 = vmul.f32 1.442695, %v207_v29  ;;  %v224_v34 = vadd.f32 %v783_v22, %v223_v28 }
  0xbe   :  { %v787_v32 = vpop.eup %786  ;;  %v218_v33 = vadd.f32 1.0, %v785_v30 }
  0xbf   :  { %v236_v35 = vmul.f32 %v787_v32, %v217_v23  ;;  %788 = vpow2.f32 %v214_v31  ;;  %v228_v40 = vsel %vm227_vm3, %v783_v22, %v224_v34  ;;  %vm241_vm4 = vweird.f32 %v787_v32 }
  0xc0   :  { %790 = vrcp.f32 %v218_v33  ;;  %v233_v47 = vsel %vm230_vm5, %v232_v43, %v228_v40  ;;  %vm242_vm7 = vmor %vm240_vm6, %vm241_vm4  ;;  %v261_v61 = vand.u32 2147483648, %v218_v33  ;;  %vm255_vm10 = vweird.f32 %v218_v33 }
  0xc1   :  { %v237_v38 = vsub.f32 1.0, %v236_v35  ;;  %v234_v53 = vmul.f32 %v233_v47, %v1123_v6  ;;  %v259_v62 = vand.u32 2147483647, %v218_v33 }
  0xc2   :  { %v262_v4 = vor.u32 1.1754944e-38, %v261_v61 }
  0xc3   :  { %v238_v41 = vmul.f32 %v787_v32, %v237_v38  ;;  %vm260_vm13 = vcmp.eq.f32.partialorder %v259_v62, 8.507059e+37 }
  0xc5   :  { %v789_v44 = vpop.eup %788  ;;  %v239_v45 = vadd.f32 %v787_v32, %v238_v41 }
  0xc6   :  { %v791_v46 = vpop.eup %790  ;;  %v219_v49 = vadd.f32 1.0, %v789_v44 }
  0xc7   :  { %v243_v50 = vsel %vm242_vm7, %v787_v32, %v239_v45  ;;  %v251_v51 = vmul.f32 %v791_v46, %v218_v33  ;;  %vm256_vm9 = vweird.f32 %v791_v46 }
  0xc8   :  { %v248_v52 = vsel %vm245_vm8, %v247_v48, %v243_v50  ;;  %792 = vrcp.f32 %v219_v49  ;;  %vm257_vm11 = vmor %vm255_vm10, %vm256_vm9  ;;  %v276_v0 = vand.u32 2147483648, %v219_v49  ;;  %v274_v3 = vand.u32 2147483647, %v219_v49 }
  0xc9   :  { %v249_v54 = vmul.f32 %v248_v52, %v197_v11  ;;  %v252_v55 = vsub.f32 1.0, %v251_v51  ;;  %vm270_vm14 = vweird.f32 %v219_v49 }
  0xca   :  { %v277_v7 = vor.u32 1.1754944e-38, %v276_v0  ;;  %vm275_vm1 = vcmp.eq.f32.partialorder %v274_v3, 8.507059e+37 }
  0xcb   :  { %v253_v56 = vmul.f32 %v791_v46, %v252_v55  ;;  %v280_v57 = vpack.c.bf16 %v249_v54, %v234_v53 }
  0xcd   :  { %729 = vmatmul.msk.bf16.vlgmr.msra.gmra.mxu1 %vm142_vm0, %v280_v57  ;;  %v254_v59 = vadd.f32 %v791_v46, %v253_v56 }
  0xce   :  { %v793_v58 = vpop.eup %792 }
  0xcf   :  { %v266_v60 = vmul.f32 %v793_v58, %v219_v49  ;;  %v258_v1 = vsel %vm257_vm11, %v791_v46, %v254_v59  ;;  %vm271_vm12 = vweird.f32 %v793_v58 }
  0xd0   :  { %v263_v6 = vsel %vm260_vm13, %v262_v4, %v258_v1  ;;  %vm272_vm15 = vmor %vm270_vm14, %vm271_vm12 }
  0xd1   :  { %v267_v63 = vsub.f32 1.0, %v266_v60  ;;  %v264_v10 = vmul.f32 %v263_v6, %v1126_v18 }
  0xd3   :  { %v268_v2 = vmul.f32 %v793_v58, %v267_v63 }
  0xd5   :  { %v269_v5 = vadd.f32 %v793_v58, %v268_v2 }
  0xd7   :  { %v273_v8 = vsel %vm272_vm15, %v793_v58, %v269_v5 }
  0xd8   :  { %v278_v9 = vsel %vm275_vm1, %v277_v7, %v273_v8 }
  0xd9   :  { %v279_v11 = vmul.f32 %v278_v9, %v1129_v27 }
  0xdb   :  { %v281_v12 = vpack.c.bf16 %v279_v11, %v264_v10 }
  0xdd   :  { %730 = vmatmul.msk.bf16.gmra.mxu1 %vm142_vm0, %v281_v12 }
 0x14a   :  { %v317_v14 = vpop.f32.mrf.mxu1 }
 0x14b   :  { %v1140_v15 = vadd.f32 %v774_v13, %v317_v14 }
 0x14d   :  { %v327_v16 = vsub.f32 0.0, %v1140_v15 }
 0x14f   :  { %v331_v17 = vmul.f32 1.442695, %v327_v16 }
 0x151   :  { %794 = vpow2.f32 %v331_v17 }
 0x152   :  { %v319_v20 = vpop.f32.mrf.mxu1 }
 0x153   :  { %v320_v18 = vadd.f32 %v774_v13, %v319_v20 }
 0x155   :  { %v328_v22 = vsub.f32 0.0, %v320_v18 }
 0x157   :  { %v795_v23 = vpop.eup %794  ;;  %v333_v24 = vmul.f32 1.442695, %v328_v22  ;;  %v775_v22 = vld [vmem:[%s1250_s7] ss:$0 sm:$0xff] }
 0x158   :  { %v339_v25 = vadd.f32 1.0, %v795_v23 }
 0x159   :  { %796 = vpow2.f32 %v333_v24 }
 0x15a   :  { %798 = vrcp.f32 %v339_v25  ;;  %v322_v26 = vpop.f32.mrf.mxu1  ;;  %v354_v45 = vand.u32 2147483648, %v339_v25  ;;  %vm348_vm3 = vweird.f32 %v339_v25  ;;  %v352_v46 = vand.u32 2147483647, %v339_v25 }
 0x15b   :  { %v1143_v27 = vadd.f32 %v774_v13, %v322_v26 }
 0x15c   :  { %v355_v52 = vor.u32 1.1754944e-38, %v354_v45  ;;  %vm353_vm6 = vcmp.eq.f32.partialorder %v352_v46, 8.507059e+37 }
 0x15d   :  { %v329_v28 = vsub.f32 0.0, %v1143_v27 }
 0x15f   :  { %v797_v29 = vpop.eup %796  ;;  %v335_v30 = vmul.f32 1.442695, %v329_v28  ;;  %v762_v28 = vld [vmem:[#allocation12 + $0x8] sm:$0xff] }
 0x160   :  { %v799_v31 = vpop.eup %798  ;;  %v340_v32 = vadd.f32 1.0, %v797_v29  ;;  %560 = vmatpush.bf16.msra.mxu3 %v762_v28 }
 0x161   :  { %v344_v33 = vmul.f32 %v799_v31, %v339_v25  ;;  %800 = vpow2.f32 %v335_v30  ;;  %vm349_vm2 = vweird.f32 %v799_v31  ;;  %v761_v30 = vld [vmem:[#allocation12] sm:$0xff] }
 0x162   :  { %802 = vrcp.f32 %v340_v32  ;;  %v324_v34 = vpop.f32.mrf.mxu1  ;;  %vm350_vm4 = vmor %vm348_vm3, %vm349_vm2  ;;  %v369_v48 = vand.u32 2147483648, %v340_v32  ;;  %v367_v51 = vand.u32 2147483647, %v340_v32  ;;  %vm363_vm7 = vweird.f32 %v340_v32 }
 0x163   :  { %v345_v35 = vsub.f32 1.0, %v344_v33  ;;  %v1146_v36 = vadd.f32 %v774_v13, %v324_v34 }
 0x164   :  { %v370_v57 = vor.u32 1.1754944e-38, %v369_v48  ;;  %vm368_vm9 = vcmp.eq.f32.partialorder %v367_v51, 8.507059e+37  ;;  %561 = vmatpush.bf16.msra.mxu3 %v761_v30 }
 0x165   :  { %v346_v37 = vmul.f32 %v799_v31, %v345_v35  ;;  %v330_v38 = vsub.f32 0.0, %v1146_v36 }
 0x167   :  { %v801_v39 = vpop.eup %800  ;;  %v337_v40 = vmul.f32 1.442695, %v330_v38  ;;  %v347_v43 = vadd.f32 %v799_v31, %v346_v37 }
 0x168   :  { %v803_v41 = vpop.eup %802  ;;  %v341_v42 = vadd.f32 1.0, %v801_v39 }
 0x169   :  { %v359_v44 = vmul.f32 %v803_v41, %v340_v32  ;;  %804 = vpow2.f32 %v337_v40  ;;  %v351_v49 = vsel %vm350_vm4, %v799_v31, %v347_v43  ;;  %vm364_vm5 = vweird.f32 %v803_v41 }
 0x16a   :  { %806 = vrcp.f32 %v341_v42  ;;  %v356_v56 = vsel %vm353_vm6, %v355_v52, %v351_v49  ;;  %vm365_vm8 = vmor %vm363_vm7, %vm364_vm5  ;;  %v384_v6 = vand.u32 2147483648, %v341_v42  ;;  %vm378_vm11 = vweird.f32 %v341_v42 }
 0x16b   :  { %v360_v47 = vsub.f32 1.0, %v359_v44  ;;  %v357_v62 = vmul.f32 %v356_v56, %v1140_v15  ;;  %v382_v7 = vand.u32 2147483647, %v341_v42 }
 0x16c   :  { %v385_v13 = vor.u32 1.1754944e-38, %v384_v6 }
 0x16d   :  { %v361_v50 = vmul.f32 %v803_v41, %v360_v47  ;;  %vm383_vm14 = vcmp.eq.f32.partialorder %v382_v7, 8.507059e+37 }
 0x16f   :  { %v805_v53 = vpop.eup %804  ;;  %v362_v54 = vadd.f32 %v803_v41, %v361_v50 }
 0x170   :  { %v807_v55 = vpop.eup %806  ;;  %v342_v58 = vadd.f32 1.0, %v805_v53 }
 0x171   :  { %v366_v59 = vsel %vm365_vm8, %v803_v41, %v362_v54  ;;  %v374_v60 = vmul.f32 %v807_v55, %v341_v42  ;;  %vm379_vm10 = vweird.f32 %v807_v55 }
 0x172   :  { %v371_v61 = vsel %vm368_vm9, %v370_v57, %v366_v59  ;;  %808 = vrcp.f32 %v342_v58  ;;  %vm380_vm12 = vmor %vm378_vm11, %vm379_vm10  ;;  %v399_v9 = vand.u32 2147483648, %v342_v58  ;;  %v397_v12 = vand.u32 2147483647, %v342_v58 }
 0x173   :  { %v372_v63 = vmul.f32 %v371_v61, %v320_v18  ;;  %v375_v0 = vsub.f32 1.0, %v374_v60  ;;  %vm393_vm15 = vweird.f32 %v342_v58 }
 0x174   :  { %v400_v16 = vor.u32 1.1754944e-38, %v399_v9  ;;  %vm398_vm2 = vcmp.eq.f32.partialorder %v397_v12, 8.507059e+37 }
 0x175   :  { %v376_v1 = vmul.f32 %v807_v55, %v375_v0  ;;  %v403_v2 = vpack.c.bf16 %v372_v63, %v357_v62 }
 0x177   :  { %739 = vmatmul.msk.bf16.vlgmr.msra.gmra.mxu2 %vm142_vm0, %v403_v2  ;;  %v377_v4 = vadd.f32 %v807_v55, %v376_v1 }
 0x178   :  { %v809_v3 = vpop.eup %808 }
 0x179   :  { %v389_v5 = vmul.f32 %v809_v3, %v342_v58  ;;  %v381_v10 = vsel %vm380_vm12, %v807_v55, %v377_v4  ;;  %vm394_vm13 = vweird.f32 %v809_v3 }
 0x17a   :  { %v386_v15 = vsel %vm383_vm14, %v385_v13, %v381_v10  ;;  %vm395_vm1 = vmor %vm393_vm15, %vm394_vm13 }
 0x17b   :  { %v390_v8 = vsub.f32 1.0, %v389_v5  ;;  %v387_v20 = vmul.f32 %v386_v15, %v1143_v27 }
 0x17d   :  { %v391_v11 = vmul.f32 %v809_v3, %v390_v8 }
 0x17f   :  { %v392_v14 = vadd.f32 %v809_v3, %v391_v11 }
 0x181   :  { %v396_v17 = vsel %vm395_vm1, %v809_v3, %v392_v14 }
 0x182   :  { %v401_v19 = vsel %vm398_vm2, %v400_v16, %v396_v17 }
 0x183   :  { %v402_v18 = vmul.f32 %v401_v19, %v1146_v36 }
 0x185   :  { %v404_v21 = vpack.c.bf16 %v402_v18, %v387_v20 }
 0x187   :  { %740 = vmatmul.msk.bf16.gmra.mxu2 %vm142_vm0, %v404_v21 }
 0x1fa   :  { %v440_v23 = vpop.f32.mrf.mxu2 }
 0x1fb   :  { %v1157_v24 = vadd.f32 %v775_v22, %v440_v23 }
 0x1fd   :  { %v450_v25 = vsub.f32 0.0, %v1157_v24 }
 0x1ff   :  { %v454_v26 = vmul.f32 1.442695, %v450_v25 }
 0x201   :  { %810 = vpow2.f32 %v454_v26 }
 0x202   :  { %v442_v29 = vpop.f32.mrf.mxu2 }
 0x203   :  { %v443_v27 = vadd.f32 %v775_v22, %v442_v29 }
 0x205   :  { %v451_v31 = vsub.f32 0.0, %v443_v27 }
 0x207   :  { %v811_v32 = vpop.eup %810  ;;  %v456_v33 = vmul.f32 1.442695, %v451_v31  ;;  %v776_v31 = vld [vmem:[%s1252_s9] ss:$0 sm:$0xff]  ;;  %s1029_s9 = smov [#allocation14]  }
 0x208   :  { %v462_v34 = vadd.f32 1.0, %v811_v32  ;;  %s688_s24 = sshll.u32 %s1029_s9, 4  ;;  %s689_s24 = int_to_ptr.vmem [resolvable:$true] %s688_s24 }
 0x209   :  { %812 = vpow2.f32 %v456_v33 }
 0x20a   :  { %814 = vrcp.f32 %v462_v34  ;;  %v445_v35 = vpop.f32.mrf.mxu2  ;;  %v477_v54 = vand.u32 2147483648, %v462_v34  ;;  %vm471_vm4 = vweird.f32 %v462_v34  ;;  %v475_v55 = vand.u32 2147483647, %v462_v34 }
 0x20b   :  { %v1160_v36 = vadd.f32 %v775_v22, %v445_v35 }
 0x20c   :  { %v478_v61 = vor.u32 1.1754944e-38, %v477_v54  ;;  %vm476_vm7 = vcmp.eq.f32.partialorder %v475_v55, 8.507059e+37  ;;  %v1028_v55 = vmov 0.0  }
 0x20d   :  { %v452_v37 = vsub.f32 0.0, %v1160_v36  ;;  %143 = vst.msk [vmem:[#allocation2] sm:$0xff] %vm142_vm0, %v1028_v55 }
 0x20f   :  { %v813_v38 = vpop.eup %812  ;;  %v458_v39 = vmul.f32 1.442695, %v452_v37 }
 0x210   :  { %v815_v40 = vpop.eup %814  ;;  %v463_v41 = vadd.f32 1.0, %v813_v38 }
 0x211   :  { %v467_v42 = vmul.f32 %v815_v40, %v462_v34  ;;  %816 = vpow2.f32 %v458_v39  ;;  %vm472_vm3 = vweird.f32 %v815_v40 }
 0x212   :  { %818 = vrcp.f32 %v463_v41  ;;  %v447_v43 = vpop.f32.mrf.mxu2  ;;  %vm473_vm5 = vmor %vm471_vm4, %vm472_vm3  ;;  %v492_v57 = vand.u32 2147483648, %v463_v41  ;;  %v490_v60 = vand.u32 2147483647, %v463_v41  ;;  %vm486_vm8 = vweird.f32 %v463_v41 }
 0x213   :  { %v468_v44 = vsub.f32 1.0, %v467_v42  ;;  %v1163_v45 = vadd.f32 %v775_v22, %v447_v43 }
 0x214   :  { %v493_v2 = vor.u32 1.1754944e-38, %v492_v57  ;;  %vm491_vm10 = vcmp.eq.f32.partialorder %v490_v60, 8.507059e+37 }
 0x215   :  { %v469_v46 = vmul.f32 %v815_v40, %v468_v44  ;;  %v453_v47 = vsub.f32 0.0, %v1163_v45 }
 0x217   :  { %v817_v48 = vpop.eup %816  ;;  %v460_v49 = vmul.f32 1.442695, %v453_v47  ;;  %v470_v52 = vadd.f32 %v815_v40, %v469_v46 }
 0x218   :  { %v819_v50 = vpop.eup %818  ;;  %v464_v51 = vadd.f32 1.0, %v817_v48 }
 0x219   :  { %v482_v53 = vmul.f32 %v819_v50, %v463_v41  ;;  %820 = vpow2.f32 %v460_v49  ;;  %v474_v58 = vsel %vm473_vm5, %v815_v40, %v470_v52  ;;  %vm487_vm6 = vweird.f32 %v819_v50 }
 0x21a   :  { %822 = vrcp.f32 %v464_v51  ;;  %v479_v1 = vsel %vm476_vm7, %v478_v61, %v474_v58  ;;  %vm488_vm9 = vmor %vm486_vm8, %vm487_vm6  ;;  %v507_v15 = vand.u32 2147483648, %v464_v51  ;;  %vm501_vm12 = vweird.f32 %v464_v51 }
 0x21b   :  { %v483_v56 = vsub.f32 1.0, %v482_v53  ;;  %v480_v7 = vmul.f32 %v479_v1, %v1157_v24  ;;  %v505_v16 = vand.u32 2147483647, %v464_v51 }
 0x21c   :  { %v508_v22 = vor.u32 1.1754944e-38, %v507_v15 }
 0x21d   :  { %v484_v59 = vmul.f32 %v819_v50, %v483_v56  ;;  %vm506_vm15 = vcmp.eq.f32.partialorder %v505_v16, 8.507059e+37 }
 0x21f   :  { %v821_v62 = vpop.eup %820  ;;  %v485_v63 = vadd.f32 %v819_v50, %v484_v59 }
 0x220   :  { %v823_v0 = vpop.eup %822  ;;  %v465_v3 = vadd.f32 1.0, %v821_v62 }
 0x221   :  { %v489_v4 = vsel %vm488_vm9, %v819_v50, %v485_v63  ;;  %v497_v5 = vmul.f32 %v823_v0, %v464_v51  ;;  %vm502_vm11 = vweird.f32 %v823_v0 }
 0x222   :  { %v494_v6 = vsel %vm491_vm10, %v493_v2, %v489_v4  ;;  %824 = vrcp.f32 %v465_v3  ;;  %vm503_vm13 = vmor %vm501_vm12, %vm502_vm11  ;;  %v522_v19 = vand.u32 2147483648, %v465_v3  ;;  %v520_v21 = vand.u32 2147483647, %v465_v3 }
 0x223   :  { %v495_v8 = vmul.f32 %v494_v6, %v443_v27  ;;  %v498_v9 = vsub.f32 1.0, %v497_v5  ;;  %vm516_vm1 = vweird.f32 %v465_v3 }
 0x224   :  { %v523_v25 = vor.u32 1.1754944e-38, %v522_v19  ;;  %vm521_vm3 = vcmp.eq.f32.partialorder %v520_v21, 8.507059e+37 }
 0x225   :  { %v499_v10 = vmul.f32 %v823_v0, %v498_v9  ;;  %v526_v11 = vpack.c.bf16 %v495_v8, %v480_v7 }
 0x227   :  { %749 = vmatmul.msk.bf16.vlgmr.msra.gmra.mxu3 %vm142_vm0, %v526_v11  ;;  %v500_v13 = vadd.f32 %v823_v0, %v499_v10 }
 0x228   :  { %v825_v12 = vpop.eup %824 }
 0x229   :  { %v512_v14 = vmul.f32 %v825_v12, %v465_v3  ;;  %v504_v20 = vsel %vm503_vm13, %v823_v0, %v500_v13  ;;  %vm517_vm14 = vweird.f32 %v825_v12 }
 0x22a   :  { %v509_v24 = vsel %vm506_vm15, %v508_v22, %v504_v20  ;;  %vm518_vm2 = vmor %vm516_vm1, %vm517_vm14 }
 0x22b   :  { %v513_v17 = vsub.f32 1.0, %v512_v14  ;;  %v510_v29 = vmul.f32 %v509_v24, %v1160_v36 }
 0x22d   :  { %v514_v18 = vmul.f32 %v825_v12, %v513_v17  ;;  %v649_v17 = vlaneseq }
 0x22f   :  { %v515_v23 = vadd.f32 %v825_v12, %v514_v18 }
 0x231   :  { %v519_v26 = vsel %vm518_vm2, %v825_v12, %v515_v23 }
 0x232   :  { %v524_v28 = vsel %vm521_vm3, %v523_v25, %v519_v26 }
 0x233   :  { %v525_v27 = vmul.f32 %v524_v28, %v1163_v45 }
 0x235   :  { %v527_v30 = vpack.c.bf16 %v525_v27, %v510_v29 }
 0x237   :  { %750 = vmatmul.msk.bf16.gmra.mxu3 %vm142_vm0, %v527_v30 }
 0x2aa   :  { %v563_v32 = vpop.f32.mrf.mxu3 }
 0x2ab   :  { %v1174_v33 = vadd.f32 %v776_v31, %v563_v32  ;;  %v777_v32 = vld [vmem:[#allocation3] ss:$0 sm:$0xff] }
 0x2ad   :  { %v573_v34 = vsub.f32 0.0, %v1174_v33 }
 0x2af   :  { %v577_v36 = vmul.f32 1.442695, %v573_v34 }
 0x2b2   :  { %v565_v35 = vpop.f32.mrf.mxu3 }
 0x2b3   :  { %v1177_v37 = vadd.f32 %v776_v31, %v565_v35 }
 0x2b5   :  { %v574_v38 = vsub.f32 0.0, %v1177_v37 }
 0x2b7   :  { %v579_v39 = vmul.f32 1.442695, %v574_v38 }
 0x2b9   :  { %826 = vpow2.f32 %v579_v39 }
 0x2ba   :  { %828 = vpow2.f32 %v577_v36  ;;  %v568_v40 = vpop.f32.mrf.mxu3 }
 0x2bb   :  { %v1180_v41 = vadd.f32 %v776_v31, %v568_v40 }
 0x2bd   :  { %v575_v42 = vsub.f32 0.0, %v1180_v41 }
 0x2bf   :  { %v827_v43 = vpop.eup %826  ;;  %v581_v44 = vmul.f32 1.442695, %v575_v42 }
 0x2c0   :  { %v829_v45 = vpop.eup %828  ;;  %v1183_v46 = vadd.f32 1.0, %v827_v43 }
 0x2c1   :  { %830 = vpow2.f32 %v581_v44  ;;  %v1185_v48 = vadd.f32 1.0, %v829_v45 }
 0x2c2   :  { %v570_v47 = vpop.f32.mrf.mxu3  ;;  %832 = vrcp.f32 %v1183_v46  ;;  %vm609_vm6 = vweird.f32 %v1183_v46  ;;  %v613_v8 = vand.u32 2147483647, %v1183_v46  ;;  %v615_v14 = vand.u32 2147483648, %v1183_v46 }
 0x2c3   :  { %v1187_v49 = vadd.f32 %v776_v31, %v570_v47  ;;  %834 = vrcp.f32 %v1185_v48  ;;  %vm594_vm11 = vweird.f32 %v1185_v48  ;;  %v598_v21 = vand.u32 2147483647, %v1185_v48 }
 0x2c4   :  { %v600_v22 = vand.u32 2147483648, %v1185_v48  ;;  %v616_v29 = vor.u32 1.1754944e-38, %v615_v14  ;;  %v650_v31 = vshrl.u32 %v649_v17, 7  ;;  %vm614_vm2 = vcmp.eq.f32.partialorder %v613_v8, 8.507059e+37 }
 0x2c5   :  { %v576_v50 = vsub.f32 0.0, %v1187_v49 }
 0x2c6   :  { %v601_v38 = vor.u32 1.1754944e-38, %v600_v22 }
 0x2c7   :  { %v831_v51 = vpop.eup %830  ;;  %v583_v52 = vmul.f32 1.442695, %v576_v50 }
 0x2c8   :  { %v587_v53 = vadd.f32 1.0, %v831_v51  ;;  %v833_v54 = vpop.eup %832  ;;  %v657_v51 = vld [vmem:[#allocation2] sm:$0xff] }
 0x2c9   :  { %836 = vpow2.f32 %v583_v52  ;;  %v1194_v56 = vpop.eup %834  ;;  %v605_v58 = vmul.f32 %v833_v54, %v1183_v46  ;;  %vm610_vm7 = vweird.f32 %v833_v54 }
 0x2ca   :  { %838 = vrcp.f32 %v587_v53  ;;  %v590_v60 = vmul.f32 %v1194_v56, %v1185_v48  ;;  %vm595_vm4 = vweird.f32 %v1194_v56  ;;  %v630_v9 = vand.u32 2147483648, %v587_v53  ;;  %vm1217_vm12 = vmor %vm609_vm6, %vm610_vm7 }
 0x2cb   :  { %v606_v63 = vsub.f32 1.0, %v605_v58  ;;  %vm624_vm8 = vweird.f32 %v587_v53  ;;  %v628_v11 = vand.u32 2147483647, %v587_v53  ;;  %vm1223_vm13 = vmor %vm594_vm11, %vm595_vm4  ;;  %vm599_vm4 = vcmp.eq.f32.partialorder %v598_v21, 8.507059e+37 }
 0x2cc   :  { %v591_v1 = vsub.f32 1.0, %v590_v60  ;;  %v631_v24 = vor.u32 1.1754944e-38, %v630_v9 }
 0x2cd   :  { %v607_v3 = vmul.f32 %v833_v54, %v606_v63  ;;  %vm629_vm14 = vcmp.eq.f32.partialorder %v628_v11, 8.507059e+37 }
 0x2ce   :  { %v592_v5 = vmul.f32 %v1194_v56, %v591_v1 }
 0x2cf   :  { %v837_v57 = vpop.eup %836  ;;  %v608_v10 = vadd.f32 %v833_v54, %v607_v3 }
 0x2d0   :  { %v839_v59 = vpop.eup %838  ;;  %v588_v61 = vadd.f32 1.0, %v837_v57  ;;  %v593_v13 = vadd.f32 %v1194_v56, %v592_v5 }
 0x2d1   :  { %v620_v62 = vmul.f32 %v839_v59, %v587_v53  ;;  %vm625_vm5 = vweird.f32 %v839_v59  ;;  %v612_v26 = vsel %vm1217_vm12, %v833_v54, %v608_v10 }
 0x2d2   :  { %840 = vrcp.f32 %v588_v61  ;;  %vm1205_vm9 = vmor %vm624_vm8, %vm625_vm5  ;;  %v645_v16 = vand.u32 2147483648, %v588_v61  ;;  %v643_v18 = vand.u32 2147483647, %v588_v61  ;;  %vm639_vm15 = vweird.f32 %v588_v61 }
 0x2d3   :  { %v621_v0 = vsub.f32 1.0, %v620_v62  ;;  %v597_v34 = vsel %vm1223_vm13, %v1194_v56, %v593_v13  ;;  %v617_v36 = vsel %vm614_vm2, %v616_v29, %v612_v26  ;;  %vm653_vm5 = vcmp.eq.s32.totalorder %v650_v31, %v777_v32 }
 0x2d4   :  { %v646_v30 = vor.u32 1.1754944e-38, %v645_v16  ;;  %vm644_vm3 = vcmp.eq.f32.partialorder %v643_v18, 8.507059e+37  ;;  %v602_v43 = vsel %vm599_vm4, %v601_v38, %v597_v34  ;;  %v618_v44 = vmul.f32 %v617_v36, %v1177_v37 }
 0x2d5   :  { %v622_v2 = vmul.f32 %v839_v59, %v621_v0  ;;  %v603_v46 = vmul.f32 %v602_v43, %v1174_v33  ;;  %v751_v47 = vsel %vm653_vm5, 1.0, %v1028_v55 }
 0x2d6   :  { %v656_v50 = vpack.c.bf16 %v751_v47, %v751_v47 }
 0x2d7   :  { %v623_v6 = vadd.f32 %v839_v59, %v622_v2  ;;  %v658_v48 = vpack.c.bf16 %v618_v44, %v603_v46 }
 0x2d8   :  { %v841_v4 = vpop.eup %840 }
 0x2d9   :  { %v635_v7 = vmul.f32 %v841_v4, %v588_v61  ;;  %v627_v19 = vsel %vm1205_vm9, %v839_v59, %v623_v6  ;;  %vm640_vm10 = vweird.f32 %v841_v4 }
 0x2da   :  { %v632_v27 = vsel %vm629_vm14, %v631_v24, %v627_v19  ;;  %vm641_vm1 = vmor %vm639_vm15, %vm640_vm10 }
 0x2db   :  { %v636_v12 = vsub.f32 1.0, %v635_v7  ;;  %v633_v40 = vmul.f32 %v632_v27, %v1180_v41 }
 0x2dd   :  { %v637_v20 = vmul.f32 %v841_v4, %v636_v12 }
 0x2df   :  { %v638_v28 = vadd.f32 %v841_v4, %v637_v20 }
 0x2e1   :  { %v642_v35 = vsel %vm641_vm1, %v841_v4, %v638_v28 }
 0x2e2   :  { %v647_v39 = vsel %vm644_vm3, %v646_v30, %v642_v35 }
 0x2e3   :  { %v648_v42 = vmul.f32 %v647_v39, %v1187_v49 }
 0x2e5   :  { %v659_v45 = vpack.c.bf16 %v648_v42, %v633_v40 }
 0x2e7   :  { %669 = vmatpush.bf16.msrb.mxu0 %v659_v45 }
 0x2eb   :  { %670 = vmatpush.bf16.msrb.mxu0 %v658_v48 }
 0x2ee   :  { %752 = vmatmul.msk.bf16.vlgmr.msrb.gmra.mxu0 %vm142_vm0, %v656_v50 }
 0x36b   :  { %v672_v52 = vpop.f32.mrf.mxu0 }
 0x36c   :  { %v676_v41 = vadd.f32 %v672_v52, %v657_v51 }
 0x36e   :  { %677 = vst.msk [vmem:[#allocation2] sm:$0xff] %vm142_vm0, %v676_v41 }
 0x373   :  { %v674_v33 = vpop.f32.mrf.mxu0 }
 0x375   :  { %v681_v37 = vld [vmem:[#allocation2] sm:$0xff] }
 0x376   :  { %682 = vst.msk [vmem:[#allocation14] sm:$0xff] %vm142_vm0, %v681_v37 }
 0x377   :  { %693 = dma.vmem_to_hbm [thread:$0]  %s689_s24, 128, %s691_s26, [#allocation5]  }
 0x378   :  { %1018 = dma.done.wait [#allocation5], 128  }
 0x379   :  { %1019 = vsyncadd [#allocation5], 4294967168 }
 0x37a   :  { %698 = vsyncpa [#allocation4], 1 }
 0x37b   :  { %699 = vsyncpa [#allocation7], 1 }
 0x37c   :  { %700 = vsyncpa [#allocation10], 1 }
 0x37d   :  { %701 = vsyncpa [#allocation13], 1 }
 0x37e   :  { %702 = vsyncpa [#allocation5], 1 }

</bundles_post_ra>
